<compile_context>
chip_gen: v7x
topology: tpu7x:2x2x1
jax: 0.10.0
libtpu: 0.0.40
codegen_flags: <defaults>
</compile_context>

<pallas_src>
import functools

import jax
import jax.numpy as jnp
from jax.experimental import pallas as pl
from jax.experimental.pallas import tpu as pltpu


def _round_up(n: int, m: int) -> int:
    return ((n + m - 1) // m) * m


def mlp_kernel(x_ref, w1_ref, b1_ref, w2_ref, b2_ref, w3_ref, b3_ref, o_ref):
    """One batch tile: ((x@W1+b1).relu() @ W2 + b2).relu() @ W3 + b3.

    x / W refs are bf16 (fast MXU path); accumulation is f32; bias add, ReLU
    and the stored output are f32.
    """
    x = x_ref[...]                                   # (tm, K1) bf16
    h1 = jnp.dot(x, w1_ref[...], preferred_element_type=jnp.float32) + b1_ref[...]
    h1 = jnp.maximum(h1, 0.0).astype(jnp.bfloat16)   # back to bf16 for next MXU pass
    h2 = jnp.dot(h1, w2_ref[...], preferred_element_type=jnp.float32) + b2_ref[...]
    h2 = jnp.maximum(h2, 0.0).astype(jnp.bfloat16)
    out = jnp.dot(h2, w3_ref[...], preferred_element_type=jnp.float32) + b3_ref[...]
    o_ref[...] = out.astype(o_ref.dtype)


@functools.partial(jax.jit, static_argnames=("block_m",))
def neural_net_forward(x, w1, b1, w2, b2, w3, b3, *, block_m=256):
    """Pallas forward pass of the 3-layer MLP.

    - Pads the class dimension to a multiple of 128 (lane-dense output store),
      and the batch dimension to a multiple of the batch tile; both paddings
      are sliced off before returning.
    - Casts x and the weight matrices to bf16 in the wrapper (halves their
      HBM/VMEM traffic); biases stay f32.
    """
    M, K1 = x.shape
    H = w1.shape[1]
    C = w3.shape[1]

    # --- padding for MXU / lane friendliness -------------------------------
    C_pad = _round_up(C, 128)                    # lane-dense output
    tm = min(block_m, _round_up(M, 8))           # batch tile (multiple of 8)
    M_pad = _round_up(M, tm)

    x_p = x
    if M_pad != M:
        x_p = jnp.pad(x_p, ((0, M_pad - M), (0, 0)))
    w3_p, b3_p = w3, b3
    if C_pad != C:
        w3_p = jnp.pad(w3_p, ((0, 0), (0, C_pad - C)))
        b3_p = jnp.pad(b3_p, ((0, 0), (0, C_pad - C)))

    # bf16 matmul operands, f32 biases.
    x_bf = x_p.astype(jnp.bfloat16)
    w1_bf = w1.astype(jnp.bfloat16)
    w2_bf = w2.astype(jnp.bfloat16)
    w3_bf = w3_p.astype(jnp.bfloat16)
    b1_f = b1.astype(jnp.float32)
    b2_f = b2.astype(jnp.float32)
    b3_f = b3_p.astype(jnp.float32)

    grid = (pl.cdiv(M_pad, tm),)

    # x / out move with the grid; weights & biases stay resident (block (0,0)).
    in_specs = [
        pl.BlockSpec((tm, K1), lambda i: (i, 0)),        # x tile
        pl.BlockSpec((K1, H), lambda i: (0, 0)),         # W1 (resident)
        pl.BlockSpec((1, H), lambda i: (0, 0)),          # b1
        pl.BlockSpec((H, H), lambda i: (0, 0)),          # W2
        pl.BlockSpec((1, H), lambda i: (0, 0)),          # b2
        pl.BlockSpec((H, C_pad), lambda i: (0, 0)),      # W3 (padded)
        pl.BlockSpec((1, C_pad), lambda i: (0, 0)),      # b3 (padded)
    ]
    out_specs = pl.BlockSpec((tm, C_pad), lambda i: (i, 0))

    flops = 2 * M_pad * (K1 * H + H * H + H * C_pad)
    bytes_accessed = (
        x_bf.size * 2 + w1_bf.size * 2 + w2_bf.size * 2 + w3_bf.size * 2
        + b1_f.size * 4 + b2_f.size * 4 + b3_f.size * 4
        + M_pad * C_pad * 4
    )

    out_padded = pl.pallas_call(
        mlp_kernel,
        out_shape=jax.ShapeDtypeStruct((M_pad, C_pad), jnp.float32),
        grid=grid,
        in_specs=in_specs,
        out_specs=out_specs,
        compiler_params=pltpu.CompilerParams(
            # Batch axis is independent -> shard across TensorCores on v7x.
            dimension_semantics=("parallel",),
            # NOTE: if the weights are scaled up, raise vmem_limit_bytes here
            # (128 MiB physical on v5e/v6e, only 64 MiB on v7x).
        ),
        cost_estimate=pl.CostEstimate(
            flops=flops, transcendentals=0, bytes_accessed=bytes_accessed),
    )(x_bf, w1_bf, b1_f, w2_bf, b2_f, w3_bf, b3_f)

    return out_padded[:M, :C]


def init_params(key, tamanio_de_entrada, tamanio_oculto, numero_de_clases):
    """Deterministic synthetic init (uniform, PyTorch-Linear-like fan_in scaling)."""
    keys = jax.random.split(key, 6)

    def linear(kw, kb, fan_in, fan_out):
        bound = 1.0 / jnp.sqrt(jnp.float32(fan_in))
        w = jax.random.uniform(kw, (fan_in, fan_out), jnp.float32, -bound, bound)
        b = jax.random.uniform(kb, (1, fan_out), jnp.float32, -bound, bound)
        return w, b

    w1, b1 = linear(keys[0], keys[1], tamanio_de_entrada, tamanio_oculto)
    w2, b2 = linear(keys[2], keys[3], tamanio_oculto, tamanio_oculto)
    w3, b3 = linear(keys[4], keys[5], tamanio_oculto, numero_de_clases)
    return w1, b1, w2, b2, w3, b3


def reference_forward_f32(x, w1, b1, w2, b2, w3, b3):
    h1 = jnp.maximum(x @ w1 + b1, 0.0)
    h2 = jnp.maximum(h1 @ w2 + b2, 0.0)
    return h2 @ w3 + b3


def reference_forward_bf16(x, w1, b1, w2, b2, w3, b3):
    """Matching-precision reference (bf16 matmul inputs, f32 accumulate)."""
    bf = jnp.bfloat16
    h1 = jnp.dot(x.astype(bf), w1.astype(bf), preferred_element_type=jnp.float32) + b1
    h1 = jnp.maximum(h1, 0.0).astype(bf)
    h2 = jnp.dot(h1, w2.astype(bf), preferred_element_type=jnp.float32) + b2
    h2 = jnp.maximum(h2, 0.0).astype(bf)
    return jnp.dot(h2, w3.astype(bf), preferred_element_type=jnp.float32) + b3


if __name__ == "__main__":
    # Small but tiling-exercising shapes: 2 grid steps of tm=256 rows,
    # class dim (10) gets lane-padded to 128 inside the wrapper.
    batch = 512
    tamanio_de_entrada = 64
    tamanio_oculto = 128
    numero_de_clases = 10

    key = jax.random.PRNGKey(0)
    k_x, k_p = jax.random.split(key)
    x = jax.random.normal(k_x, (batch, tamanio_de_entrada), jnp.float32)
    params = init_params(k_p, tamanio_de_entrada, tamanio_oculto, numero_de_clases)

    out = neural_net_forward(x, *params, block_m=256)
    out = jax.block_until_ready(out)
    assert out.shape == (batch, numero_de_clases)

    # Tight check against a precision-matched (bf16 matmul) reference.
    ref_bf16 = reference_forward_bf16(x, *params)
    assert jnp.allclose(out, ref_bf16, atol=1e-3, rtol=1e-3), "mismatch vs bf16 reference"

    # Looser sanity check against the full-f32 reference (bf16 rounding noise).
    ref_f32 = reference_forward_f32(x, *params)
    assert jnp.allclose(out, ref_f32, atol=5e-2, rtol=5e-2), "mismatch vs f32 reference"

    print("KERNEL_OK")
</pallas_src>

<mosaic_0001>
module attributes {stable_mosaic.version = 11 : i64} {
  func.func @mlp_kernel(%arg0: i32, %arg1: memref<256x64xbf16, #tpu.memory_space<vmem>>, %arg2: memref<64x128xbf16, #tpu.memory_space<vmem>>, %arg3: memref<1x128xf32, #tpu.memory_space<vmem>>, %arg4: memref<128x128xbf16, #tpu.memory_space<vmem>>, %arg5: memref<1x128xf32, #tpu.memory_space<vmem>>, %arg6: memref<128x128xbf16, #tpu.memory_space<vmem>>, %arg7: memref<1x128xf32, #tpu.memory_space<vmem>>, %arg8: memref<256x128xf32, #tpu.memory_space<vmem>>) attributes {dimension_semantics = [#tpu.dimension_semantics<parallel>], iteration_bounds = array<i64: 2>, scalar_prefetch = 0 : i64, scratch_operands = 0 : i64, tpu.core_type = #tpu.core_type<tc>, window_params = [{transform_indices = @transform_0, window_bounds = array<i64: 256, 64>}, {pipeline_mode = #tpu.pipeline_mode<synchronous>, transform_indices = @transform_1, window_bounds = array<i64: 64, 128>}, {pipeline_mode = #tpu.pipeline_mode<synchronous>, transform_indices = @transform_2, window_bounds = array<i64: 1, 128>}, {pipeline_mode = #tpu.pipeline_mode<synchronous>, transform_indices = @transform_3, window_bounds = array<i64: 128, 128>}, {pipeline_mode = #tpu.pipeline_mode<synchronous>, transform_indices = @transform_4, window_bounds = array<i64: 1, 128>}, {pipeline_mode = #tpu.pipeline_mode<synchronous>, transform_indices = @transform_5, window_bounds = array<i64: 128, 128>}, {pipeline_mode = #tpu.pipeline_mode<synchronous>, transform_indices = @transform_6, window_bounds = array<i64: 1, 128>}, {transform_indices = @transform_7, window_bounds = array<i64: 256, 128>}]} {
    %c0 = arith.constant 0 : index
    %c0_0 = arith.constant 0 : index
    %0 = vector.load %arg1[%c0, %c0_0] : memref<256x64xbf16, #tpu.memory_space<vmem>>, vector<256x64xbf16>
    %c0_1 = arith.constant 0 : index
    %c0_2 = arith.constant 0 : index
    %1 = vector.load %arg2[%c0_1, %c0_2] : memref<64x128xbf16, #tpu.memory_space<vmem>>, vector<64x128xbf16>
    %cst = arith.constant dense<0.000000e+00> : vector<256x128xf32>
    %2 = tpu.matmul %0, %1, %cst {dimension_numbers = #tpu.dot_dimension_numbers<[1], [0], [0], [1], [0, 0, 1, 1], [], []>} : vector<256x64xbf16>, vector<64x128xbf16>, vector<256x128xf32> -> vector<256x128xf32>
    %c0_3 = arith.constant 0 : index
    %c0_4 = arith.constant 0 : index
    %3 = vector.load %arg3[%c0_3, %c0_4] : memref<1x128xf32, #tpu.memory_space<vmem>>, vector<1x128xf32>
    %4 = vector.broadcast %3 : vector<1x128xf32> to vector<256x128xf32>
    %5 = arith.addf %2, %4 : vector<256x128xf32>
    %cst_5 = arith.constant 0.000000e+00 : f32
    %6 = vector.broadcast %cst_5 : f32 to vector<256x128xf32>
    %7 = arith.maximumf %5, %6 : vector<256x128xf32>
    %8 = arith.truncf %7 : vector<256x128xf32> to vector<256x128xbf16>
    %c0_6 = arith.constant 0 : index
    %c0_7 = arith.constant 0 : index
    %9 = vector.load %arg4[%c0_6, %c0_7] : memref<128x128xbf16, #tpu.memory_space<vmem>>, vector<128x128xbf16>
    %cst_8 = arith.constant dense<0.000000e+00> : vector<256x128xf32>
    %10 = tpu.matmul %8, %9, %cst_8 {dimension_numbers = #tpu.dot_dimension_numbers<[1], [0], [0], [1], [0, 0, 1, 1], [], []>} : vector<256x128xbf16>, vector<128x128xbf16>, vector<256x128xf32> -> vector<256x128xf32>
    %c0_9 = arith.constant 0 : index
    %c0_10 = arith.constant 0 : index
    %11 = vector.load %arg5[%c0_9, %c0_10] : memref<1x128xf32, #tpu.memory_space<vmem>>, vector<1x128xf32>
    %12 = vector.broadcast %11 : vector<1x128xf32> to vector<256x128xf32>
    %13 = arith.addf %10, %12 : vector<256x128xf32>
    %cst_11 = arith.constant 0.000000e+00 : f32
    %14 = vector.broadcast %cst_11 : f32 to vector<256x128xf32>
    %15 = arith.maximumf %13, %14 : vector<256x128xf32>
    %16 = arith.truncf %15 : vector<256x128xf32> to vector<256x128xbf16>
    %c0_12 = arith.constant 0 : index
    %c0_13 = arith.constant 0 : index
    %17 = vector.load %arg6[%c0_12, %c0_13] : memref<128x128xbf16, #tpu.memory_space<vmem>>, vector<128x128xbf16>
    %cst_14 = arith.constant dense<0.000000e+00> : vector<256x128xf32>
    %18 = tpu.matmul %16, %17, %cst_14 {dimension_numbers = #tpu.dot_dimension_numbers<[1], [0], [0], [1], [0, 0, 1, 1], [], []>} : vector<256x128xbf16>, vector<128x128xbf16>, vector<256x128xf32> -> vector<256x128xf32>
    %c0_15 = arith.constant 0 : index
    %c0_16 = arith.constant 0 : index
    %19 = vector.load %arg7[%c0_15, %c0_16] : memref<1x128xf32, #tpu.memory_space<vmem>>, vector<1x128xf32>
    %20 = vector.broadcast %19 : vector<1x128xf32> to vector<256x128xf32>
    %21 = arith.addf %18, %20 : vector<256x128xf32>
    %c0_17 = arith.constant 0 : index
    %c0_18 = arith.constant 0 : index
    %22 = vector.load %arg8[%c0_17, %c0_18] : memref<256x128xf32, #tpu.memory_space<vmem>>, vector<256x128xf32>
    tpu.vector_store %arg8[%c0_17, %c0_18], %21 {strides = array<i32>} : memref<256x128xf32, #tpu.memory_space<vmem>>, vector<256x128xf32>,
    return
  }
  func.func @transform_0(%arg0: i32) -> (i32, i32) {
    %c0_i32 = arith.constant 0 : i32
    %c0_i32_0 = arith.constant 0 : i32
    return %arg0, %c0_i32 : i32, i32
  }
  func.func @transform_1(%arg0: i32) -> (i32, i32) {
    %c0_i32 = arith.constant 0 : i32
    %c0_i32_0 = arith.constant 0 : i32
    %c0_i32_1 = arith.constant 0 : i32
    return %c0_i32, %c0_i32_0 : i32, i32
  }
  func.func @transform_2(%arg0: i32) -> (i32, i32) {
    %c0_i32 = arith.constant 0 : i32
    %c0_i32_0 = arith.constant 0 : i32
    %c0_i32_1 = arith.constant 0 : i32
    return %c0_i32, %c0_i32_0 : i32, i32
  }
  func.func @transform_3(%arg0: i32) -> (i32, i32) {
    %c0_i32 = arith.constant 0 : i32
    %c0_i32_0 = arith.constant 0 : i32
    %c0_i32_1 = arith.constant 0 : i32
    return %c0_i32, %c0_i32_0 : i32, i32
  }
  func.func @transform_4(%arg0: i32) -> (i32, i32) {
    %c0_i32 = arith.constant 0 : i32
    %c0_i32_0 = arith.constant 0 : i32
    %c0_i32_1 = arith.constant 0 : i32
    return %c0_i32, %c0_i32_0 : i32, i32
  }
  func.func @transform_5(%arg0: i32) -> (i32, i32) {
    %c0_i32 = arith.constant 0 : i32
    %c0_i32_0 = arith.constant 0 : i32
    %c0_i32_1 = arith.constant 0 : i32
    return %c0_i32, %c0_i32_0 : i32, i32
  }
  func.func @transform_6(%arg0: i32) -> (i32, i32) {
    %c0_i32 = arith.constant 0 : i32
    %c0_i32_0 = arith.constant 0 : i32
    %c0_i32_1 = arith.constant 0 : i32
    return %c0_i32, %c0_i32_0 : i32, i32
  }
  func.func @transform_7(%arg0: i32) -> (i32, i32) {
    %c0_i32 = arith.constant 0 : i32
    %c0_i32_0 = arith.constant 0 : i32
    return %arg0, %c0_i32 : i32, i32
  }
}

</mosaic_0001>

<bundles_post_ra>
// kernel: neural_net_forward.1
= control target key start
LH: loop header
LB: loop body
LE: loop exit
PB: predicated region body
PF: predicated region fallthrough
CT: control target
= control target key end

     0   :  { %s1662_s24 = smov 0   ;;  %s1934_s0 = inlined_call_operand.vmem [shape: bf16[512,64], index: 0, kind: input, shape index: {}]   ;;  %s1935_s1 = inlined_call_operand.vmem [shape: bf16[64,128], index: 1, kind: input, shape index: {}]   ;;  %s1936_s2 = inlined_call_operand.vmem [shape: f32[1,128], index: 2, kind: input, shape index: {}]   ;;  %s1937_s3 = inlined_call_operand.vmem [shape: bf16[128,128], index: 3, kind: input, shape index: {}]   ;;  %s1938_s4 = inlined_call_operand.vmem [shape: f32[1,128], index: 4, kind: input, shape index: {}]   ;;  %s1939_s5 = inlined_call_operand.vmem [shape: bf16[128,128], index: 5, kind: input, shape index: {}]   ;;  %s1940_s6 = inlined_call_operand.vmem [shape: f32[1,128], index: 6, kind: input, shape index: {}]   ;;  %s1941_s7 = inlined_call_operand.vmem [shape: f32[512,128], index: 7, kind: output, shape index: {}]  }
   0x1 LB: > { %s1292_s25 = sadd.s32 4294967295, %s1620_s24   ;;  %p1296_p0 = scmp.ge.s32.totalorder %s1620_s24, 1  ;;  %s1620_s24 = sphi %s1662_s24, %s17_s24  }
   0x2   : > { %p238_p1 = scmp.lt.s32.totalorder %s1620_s24, 3 }
   0x4   : > { %p239_p2 = pnand %p1296_p0, %p238_p1 }
   0x5   : > { %v1578_v0 = vld [vmem:[%s1935_s1] sm:$0xff] (!%p239_p2)   ;;  %s1297_s28 = sshll.u32 (!%p239_p2), %s1292_s25, 5  ;;  %v1579_v1 = vld [vmem:[%s1935_s1 + $0x8] sm:$0xff] (!%p239_p2)   ;;  %v1580_v2 = vld [vmem:[%s1935_s1 + $0x10] sm:$0xff] (!%p239_p2)   ;;  %vm434_vm0 = vcmask (!%p239_p2), 523264  }
   0x6   : > { %242 = sbr.rel (%p239_p2) target bundleno = 740 (0x2e4), region = 48  ;;  %p271_p3 = scmp.lt.s32.totalorder (!%p239_p2), %s1297_s28, 63  ;;  %1426 = vmatprep.subr.bf16.mxu0 (!%p239_p2), %v1578_v0  ;;  %1562 = vmatprep.subr.bf16.mxu1 (!%p239_p2), %v1578_v0  ;;  %v1581_v4 = vld [vmem:[%s1935_s1 + $0x18] sm:$0xff] (!%p239_p2)   ;;  %v1598_v5 = vld [vmem:[%s1937_s3] sm:$0xff] (!%p239_p2)   ;;  %v1599_v9 = vld [vmem:[%s1937_s3 + $0x8] sm:$0xff] (!%p239_p2)  }
   0x7   : > { %1427 = vmatpush3.bf16.msra.mxu0 (!%p239_p2), %v1578_v0  ;;  %1566 = vmatpush3.bf16.msra.mxu1 (!%p239_p2), %v1578_v0  ;;  %v1600_v12 = vld [vmem:[%s1937_s3 + $0x10] sm:$0xff] (!%p239_p2)   ;;  %v1601_v17 = vld [vmem:[%s1937_s3 + $0x18] sm:$0xff] (!%p239_p2)   ;;  %v1602_v18 = vld [vmem:[%s1937_s3 + $0x20] sm:$0xff] (!%p239_p2)  }
   0x8   : > { %1428 = vmatprep.subr.bf16.mxu0 (!%p239_p2), %v1579_v1  ;;  %1563 = vmatprep.subr.bf16.mxu1 (!%p239_p2), %v1579_v1  ;;  %v1603_v23 = vld [vmem:[%s1937_s3 + $0x28] sm:$0xff] (!%p239_p2)   ;;  %v1604_v26 = vld [vmem:[%s1937_s3 + $0x30] sm:$0xff] (!%p239_p2)   ;;  %v1605_v27 = vld [vmem:[%s1937_s3 + $0x38] sm:$0xff] (!%p239_p2)  }
   0x9   : > { %v1606_v28 = vld [vmem:[%s1939_s5] sm:$0xff] (!%p239_p2)   ;;  %v1607_v29 = vld [vmem:[%s1939_s5 + $0x8] sm:$0xff] (!%p239_p2)   ;;  %v1608_v30 = vld [vmem:[%s1939_s5 + $0x10] sm:$0xff] (!%p239_p2)  }
   0xa   : > { %v1609_v31 = vld [vmem:[%s1939_s5 + $0x18] sm:$0xff] (!%p239_p2)   ;;  %v1610_v32 = vld [vmem:[%s1939_s5 + $0x20] sm:$0xff] (!%p239_p2)   ;;  %v1611_v33 = vld [vmem:[%s1939_s5 + $0x28] sm:$0xff] (!%p239_p2)  }
   0xb   : > { %1429 = vmatpush3.bf16.msra.mxu0 (!%p239_p2), %v1579_v1  ;;  %1567 = vmatpush3.bf16.msra.mxu1 (!%p239_p2), %v1579_v1  ;;  %v1767_v34 = vld [vmem:[%s1936_s2] ss:$0 sm:$0xff] (!%p239_p2) }
   0xc   : > { %1430 = vmatprep.subr.bf16.mxu0 (!%p239_p2), %v1580_v2  ;;  %1564 = vmatprep.subr.bf16.mxu1 (!%p239_p2), %v1580_v2 }
   0xd   : > { %s1943_s28 = smov (!%p271_p3, %s1297_s28), 63 }
   0xe   : > { %s1298_s10 = sshll.u32 %s1943_s28, 2 }
   0xf   : > { %s1685_s13 = scalar_lea.vmem %s1934_s0, %s1298_s10  ;;  %1431 = vmatpush3.bf16.msra.mxu0 %v1580_v2  ;;  %1568 = vmatpush3.bf16.msra.mxu1 %v1580_v2  ;;  %s1300_s10 = sshll.u32 %s1943_s28, 3 }
  0x10   : > { %v1582_v3 = vld [vmem:[%s1685_s13] sm:$0xff]   ;;  %1432 = vmatprep.subr.bf16.mxu0 %v1581_v4  ;;  %1565 = vmatprep.subr.bf16.mxu1 %v1581_v4  ;;  %v1583_v6 = vld [vmem:[%s1685_s13 + $0x8] sm:$0xff]   ;;  %v1584_v7 = vld [vmem:[%s1685_s13 + $0x10] sm:$0xff]   ;;  %s1865_s15 = scalar_lea.vmem %s1941_s7, %s1300_s10 }
  0x11   : > { %1434 = vmatprep.mubr.msk.bf16.mxu0 %vm434_vm0, %v1582_v3  ;;  %v1590_v8 = vld [vmem:[%s1685_s13 + $0x40] sm:$0xff]   ;;  %v1591_v10 = vld [vmem:[%s1685_s13 + $0x48] sm:$0xff]   ;;  %v1592_v11 = vld [vmem:[%s1685_s13 + $0x50] sm:$0xff]  }
  0x12   : > { %1450 = vmatprep.mubr.msk.bf16.mxu1 %vm434_vm0, %v1590_v8  ;;  %v1585_v13 = vld [vmem:[%s1685_s13 + $0x18] sm:$0xff]   ;;  %v1586_v14 = vld [vmem:[%s1685_s13 + $0x20] sm:$0xff]   ;;  %v1587_v19 = vld [vmem:[%s1685_s13 + $0x28] sm:$0xff]  }
  0x13   : > { %1433 = vmatpush3.bf16.msra.mxu0 %v1581_v4  ;;  %1569 = vmatpush3.bf16.msra.mxu1 %v1581_v4  ;;  %v1593_v15 = vld [vmem:[%s1685_s13 + $0x58] sm:$0xff]   ;;  %v1594_v16 = vld [vmem:[%s1685_s13 + $0x60] sm:$0xff]   ;;  %v1595_v20 = vld [vmem:[%s1685_s13 + $0x68] sm:$0xff]  }
  0x14   : > { %1466 = vmatprep.subr.bf16.mxu1 %v1598_v5  ;;  %v1588_v21 = vld [vmem:[%s1685_s13 + $0x30] sm:$0xff]   ;;  %v1589_v24 = vld [vmem:[%s1685_s13 + $0x38] sm:$0xff]   ;;  %1514 = vmatprep.subr.bf16.mxu0 %v1606_v28 }
  0x15   : > { %v1596_v22 = vld [vmem:[%s1685_s13 + $0x70] sm:$0xff]   ;;  %v1597_v25 = vld [vmem:[%s1685_s13 + $0x78] sm:$0xff]  }
  0x16   : > { %1435 = vmatmul.mubr.msk.bf16.vlgmr.msra.gmra.mrb[0].mxu0 %vm434_vm0, %v1583_v6  ;;  %1451 = vmatmul.mubr.msk.bf16.vlgmr.msra.gmra.mrb[0].mxu1 %vm434_vm0, %v1591_v10 }
  0x17   : > { %1438 = vmatprep.mubr.msk.bf16.mxu0 %vm434_vm0, %v1584_v7  ;;  %1454 = vmatprep.mubr.msk.bf16.mxu1 %vm434_vm0, %v1592_v11 }
  0x18   : > { %1467 = vmatpush3.bf16.msra.mxu1 %v1598_v5  ;;  %1515 = vmatpush3.bf16.msra.mxu0 %v1606_v28 }
  0x19   : > { %1468 = vmatprep.subr.bf16.mxu1 %v1599_v9  ;;  %1516 = vmatprep.subr.bf16.mxu0 %v1607_v29 }
  0x1c   : > { %1469 = vmatpush3.bf16.msra.mxu1 %v1599_v9  ;;  %1517 = vmatpush3.bf16.msra.mxu0 %v1607_v29 }
  0x1d   : > { %1470 = vmatprep.subr.bf16.mxu1 %v1600_v12  ;;  %1518 = vmatprep.subr.bf16.mxu0 %v1608_v30 }
  0x1e   : > { %1439 = vmatmul.mubr.msk.bf16.gmra.mrb[4].mxu0 %vm434_vm0, %v1585_v13  ;;  %1455 = vmatmul.mubr.msk.bf16.gmra.mrb[4].mxu1 %vm434_vm0, %v1593_v15 }
  0x1f   : > { %1442 = vmatprep.mubr.msk.bf16.mxu0 %vm434_vm0, %v1586_v14  ;;  %1458 = vmatprep.mubr.msk.bf16.mxu1 %vm434_vm0, %v1594_v16 }
  0x20   : > { %1471 = vmatpush3.bf16.msra.mxu1 %v1600_v12  ;;  %1519 = vmatpush3.bf16.msra.mxu0 %v1608_v30 }
  0x21   : > { %1472 = vmatprep.subr.bf16.mxu1 %v1601_v17  ;;  %1520 = vmatprep.subr.bf16.mxu0 %v1609_v31 }
  0x24   : > { %1473 = vmatpush3.bf16.msra.mxu1 %v1601_v17  ;;  %1521 = vmatpush3.bf16.msra.mxu0 %v1609_v31 }
  0x25   : > { %1474 = vmatprep.subr.bf16.mxu1 %v1602_v18  ;;  %1522 = vmatprep.subr.bf16.mxu0 %v1610_v32 }
  0x26   : > { %1443 = vmatmul.mubr.msk.bf16.gmra.mrb[8].mxu0 %vm434_vm0, %v1587_v19  ;;  %1459 = vmatmul.mubr.msk.bf16.gmra.mrb[8].mxu1 %vm434_vm0, %v1595_v20 }
  0x27   : > { %1446 = vmatprep.mubr.msk.bf16.mxu0 %vm434_vm0, %v1588_v21  ;;  %1462 = vmatprep.mubr.msk.bf16.mxu1 %vm434_vm0, %v1596_v22 }
  0x28   : > { %1475 = vmatpush3.bf16.msra.mxu1 %v1602_v18  ;;  %1523 = vmatpush3.bf16.msra.mxu0 %v1610_v32 }
  0x29   : > { %1476 = vmatprep.subr.bf16.mxu1 %v1603_v23  ;;  %1524 = vmatprep.subr.bf16.mxu0 %v1611_v33 }
  0x2c   : > { %1477 = vmatpush3.bf16.msra.mxu1 %v1603_v23  ;;  %1525 = vmatpush3.bf16.msra.mxu0 %v1611_v33 }
  0x2d   : > { %1478 = vmatprep.subr.bf16.mxu1 %v1604_v26 }
  0x2e   : > { %1447 = vmatmul.mubr.msk.bf16.gmra.mrb[12].mxu0 %vm434_vm0, %v1589_v24  ;;  %1463 = vmatmul.mubr.msk.bf16.gmra.mrb[12].mxu1 %vm434_vm0, %v1597_v25 }
  0x30   : > { %1479 = vmatpush3.bf16.msra.mxu1 %v1604_v26 }
  0x31   : > { %1480 = vmatprep.subr.bf16.mxu1 %v1605_v27 }
  0x34   : > { %1481 = vmatpush3.bf16.msra.mxu1 %v1605_v27 }
  0xe9   : > { %v1436_v35 = vpop.f32.mrb[0].mxu0  ;;  %v1452_v36 = vpop.f32.mrb[0].mxu1 }
  0xea   : > { %v526_v37 = vadd.f32 %v1436_v35, %v1767_v34  ;;  %v517_v38 = vpop.f32.mrb[1].mxu0  ;;  %v590_v39 = vadd.f32 %v1452_v36, %v1767_v34  ;;  %v581_v40 = vpop.f32.mrb[1].mxu1 }
  0xeb   : > { %v518_v41 = vadd.f32 %v1767_v34, %v517_v38  ;;  %v1437_v42 = vpop.f32.mrb[2].mxu0  ;;  %v582_v43 = vadd.f32 %v1767_v34, %v581_v40  ;;  %v1453_v44 = vpop.f32.mrb[2].mxu1 }
  0xec   : > { %v529_v45 = vadd.f32 %v1437_v42, %v1767_v34  ;;  %v520_v46 = vpop.f32.mrb[3].mxu0  ;;  %v662_v47 = vmax.f32 %v590_v39, 0.0  ;;  %v593_v48 = vadd.f32 %v1453_v44, %v1767_v34  ;;  %v584_v49 = vpop.f32.mrb[3].mxu1  ;;  %v646_v53 = vmax.f32 %v526_v37, 0.0 }
  0xed   : > { %v521_v50 = vadd.f32 %v1767_v34, %v520_v46  ;;  %v660_v51 = vmax.f32 %v582_v43, 0.0  ;;  %v585_v52 = vadd.f32 %v1767_v34, %v584_v49  ;;  %v644_v56 = vmax.f32 %v518_v41, 0.0 }
  0xee   : > { %v647_v54 = vmax.f32 %v529_v45, 0.0  ;;  %v663_v55 = vmax.f32 %v593_v48, 0.0 }
  0xef   : > { %v645_v57 = vmax.f32 %v521_v50, 0.0  ;;  %v661_v58 = vmax.f32 %v585_v52, 0.0 }
  0xf0   : > { %v677_v59 = vpack.c.bf16 %v647_v54, %v646_v53  ;;  %v1777_v60 = vpack.c.bf16 %v663_v55, %v662_v47 }
  0xf1   : > { %v676_v61 = vpack.c.bf16 %v645_v57, %v644_v56  ;;  %v1440_v62 = vpop.f32.mrb[4].mxu0  ;;  %v1779_v63 = vpack.c.bf16 %v661_v58, %v660_v51  ;;  %v1456_v0 = vpop.f32.mrb[4].mxu1 }
  0xf2   : > { %v542_v1 = vadd.f32 %v1440_v62, %v1767_v34  ;;  %v533_v2 = vpop.f32.mrb[5].mxu0  ;;  %v606_v3 = vadd.f32 %v1456_v0, %v1767_v34  ;;  %v597_v4 = vpop.f32.mrb[5].mxu1 }
  0xf3   : > { %v534_v5 = vadd.f32 %v1767_v34, %v533_v2  ;;  %v1441_v6 = vpop.f32.mrb[6].mxu0  ;;  %1482 = vmatprep.mubr.bf16.mxu1 %v676_v61  ;;  %v598_v7 = vadd.f32 %v1767_v34, %v597_v4  ;;  %v1457_v8 = vpop.f32.mrb[6].mxu1 }
  0xf4   : > { %v545_v9 = vadd.f32 %v1441_v6, %v1767_v34  ;;  %v536_v10 = vpop.f32.mrb[7].mxu0  ;;  %1483 = vmatmul.mubr.bf16.vlgmr.msra.gmra.mrb[16].mxu1 %v677_v59  ;;  %v666_v11 = vmax.f32 %v606_v3, 0.0  ;;  %v609_v12 = vadd.f32 %v1457_v8, %v1767_v34  ;;  %v600_v13 = vpop.f32.mrb[7].mxu1  ;;  %v650_v17 = vmax.f32 %v542_v1, 0.0 }
  0xf5   : > { %v537_v14 = vadd.f32 %v1767_v34, %v536_v10  ;;  %v664_v15 = vmax.f32 %v598_v7, 0.0  ;;  %v601_v16 = vadd.f32 %v1767_v34, %v600_v13  ;;  %v648_v20 = vmax.f32 %v534_v5, 0.0 }
  0xf6   : > { %v651_v18 = vmax.f32 %v545_v9, 0.0  ;;  %v667_v19 = vmax.f32 %v609_v12, 0.0 }
  0xf7   : > { %v649_v21 = vmax.f32 %v537_v14, 0.0  ;;  %v665_v22 = vmax.f32 %v601_v16, 0.0 }
  0xf8   : > { %v679_v23 = vpack.c.bf16 %v651_v18, %v650_v17  ;;  %v1789_v24 = vpack.c.bf16 %v667_v19, %v666_v11 }
  0xf9   : > { %v678_v25 = vpack.c.bf16 %v649_v21, %v648_v20  ;;  %v1444_v26 = vpop.f32.mrb[8].mxu0  ;;  %v1791_v27 = vpack.c.bf16 %v665_v22, %v664_v15  ;;  %v1460_v28 = vpop.f32.mrb[8].mxu1 }
  0xfa   : > { %v558_v29 = vadd.f32 %v1444_v26, %v1767_v34  ;;  %v549_v30 = vpop.f32.mrb[9].mxu0  ;;  %v622_v31 = vadd.f32 %v1460_v28, %v1767_v34  ;;  %v613_v32 = vpop.f32.mrb[9].mxu1 }
  0xfb   : > { %v550_v33 = vadd.f32 %v1767_v34, %v549_v30  ;;  %v1445_v35 = vpop.f32.mrb[10].mxu0  ;;  %1486 = vmatprep.mubr.bf16.mxu1 %v678_v25  ;;  %v614_v36 = vadd.f32 %v1767_v34, %v613_v32  ;;  %v1461_v37 = vpop.f32.mrb[10].mxu1 }
  0xfc   : > { %v561_v38 = vadd.f32 %v1445_v35, %v1767_v34  ;;  %v552_v39 = vpop.f32.mrb[11].mxu0  ;;  %1487 = vmatmul.mubr.bf16.gmra.mrb[20].mxu1 %v679_v23  ;;  %v670_v40 = vmax.f32 %v622_v31, 0.0  ;;  %v625_v41 = vadd.f32 %v1461_v37, %v1767_v34  ;;  %v616_v42 = vpop.f32.mrb[11].mxu1  ;;  %v654_v46 = vmax.f32 %v558_v29, 0.0 }
  0xfd   : > { %v553_v43 = vadd.f32 %v1767_v34, %v552_v39  ;;  %v668_v44 = vmax.f32 %v614_v36, 0.0  ;;  %v617_v45 = vadd.f32 %v1767_v34, %v616_v42  ;;  %v652_v49 = vmax.f32 %v550_v33, 0.0 }
  0xfe   : > { %v655_v47 = vmax.f32 %v561_v38, 0.0  ;;  %v671_v48 = vmax.f32 %v625_v41, 0.0 }
  0xff   : > { %v653_v50 = vmax.f32 %v553_v43, 0.0  ;;  %v669_v51 = vmax.f32 %v617_v45, 0.0 }
 0x100   : > { %v681_v52 = vpack.c.bf16 %v655_v47, %v654_v46  ;;  %v689_v53 = vpack.c.bf16 %v671_v48, %v670_v40 }
 0x101   : > { %v680_v54 = vpack.c.bf16 %v653_v50, %v652_v49  ;;  %v1448_v55 = vpop.f32.mrb[12].mxu0  ;;  %v688_v56 = vpack.c.bf16 %v669_v51, %v668_v44  ;;  %v1464_v57 = vpop.f32.mrb[12].mxu1 }
 0x102   : > { %v574_v58 = vadd.f32 %v1448_v55, %v1767_v34  ;;  %v565_v59 = vpop.f32.mrb[13].mxu0  ;;  %v638_v61 = vadd.f32 %v1464_v57, %v1767_v34  ;;  %v629_v62 = vpop.f32.mrb[13].mxu1 }
 0x103   : > { %v566_v0 = vadd.f32 %v1767_v34, %v565_v59  ;;  %v1449_v1 = vpop.f32.mrb[14].mxu0  ;;  %1490 = vmatprep.mubr.bf16.mxu1 %v680_v54  ;;  %v630_v2 = vadd.f32 %v1767_v34, %v629_v62  ;;  %v1465_v3 = vpop.f32.mrb[14].mxu1 }
 0x104   : > { %v577_v4 = vadd.f32 %v1449_v1, %v1767_v34  ;;  %v568_v5 = vpop.f32.mrb[15].mxu0  ;;  %1491 = vmatmul.mubr.bf16.gmra.mrb[24].mxu1 %v681_v52  ;;  %v674_v6 = vmax.f32 %v638_v61, 0.0  ;;  %v641_v7 = vadd.f32 %v1465_v3, %v1767_v34  ;;  %v632_v8 = vpop.f32.mrb[15].mxu1  ;;  %v658_v12 = vmax.f32 %v574_v58, 0.0 }
 0x105   : > { %v569_v9 = vadd.f32 %v1767_v34, %v568_v5  ;;  %v672_v10 = vmax.f32 %v630_v2, 0.0  ;;  %v633_v11 = vadd.f32 %v1767_v34, %v632_v8  ;;  %v656_v15 = vmax.f32 %v566_v0, 0.0  ;;  %v1612_v34 = vld [vmem:[%s1939_s5 + $0x30] sm:$0xff]  }
 0x106   : > { %v659_v13 = vmax.f32 %v577_v4, 0.0  ;;  %v675_v14 = vmax.f32 %v641_v7, 0.0  ;;  %1526 = vmatprep.subr.bf16.mxu0 %v1612_v34 }
 0x107   : > { %v657_v16 = vmax.f32 %v569_v9, 0.0  ;;  %v673_v17 = vmax.f32 %v633_v11, 0.0  ;;  %1527 = vmatpush3.bf16.msra.mxu0 %v1612_v34 }
 0x108   : > { %v683_v18 = vpack.c.bf16 %v659_v13, %v658_v12  ;;  %v691_v19 = vpack.c.bf16 %v675_v14, %v674_v6 }
 0x109   : > { %v682_v20 = vpack.c.bf16 %v657_v16, %v656_v15  ;;  %v690_v21 = vpack.c.bf16 %v673_v17, %v672_v10 }
 0x10b   : > { %1494 = vmatprep.mubr.bf16.mxu1 %v682_v20 }
 0x10c   : > { %1495 = vmatmul.mubr.bf16.gmra.mrb[28].mxu1 %v683_v18 }
 0x10d   : > { %1498 = vmatprep.mubr.bf16.mxu1 %v1779_v63  ;;  %v1613_v63 = vld [vmem:[%s1939_s5 + $0x38] sm:$0xff]  }
 0x10e   : > { %1528 = vmatprep.subr.bf16.mxu0 %v1613_v63 }
 0x10f   : > { %1529 = vmatpush3.bf16.msra.mxu0 %v1613_v63 }
 0x114   : > { %1499 = vmatmul.mubr.bf16.gmra.mrb[32].mxu1 %v1777_v60  ;;  %v1822_v60 = vld [vmem:[%s1938_s4] ss:$0 sm:$0xff] }
 0x115   : > { %1502 = vmatprep.mubr.bf16.mxu1 %v1791_v27 }
 0x11c   : > { %1503 = vmatmul.mubr.bf16.gmra.mrb[36].mxu1 %v1789_v24 }
 0x11d   : > { %1506 = vmatprep.mubr.bf16.mxu1 %v688_v56 }
 0x124   : > { %1507 = vmatmul.mubr.bf16.gmra.mrb[40].mxu1 %v689_v53 }
 0x125   : > { %1510 = vmatprep.mubr.bf16.mxu1 %v690_v21 }
 0x12c   : > { %1511 = vmatmul.mubr.bf16.gmra.mrb[44].mxu1 %v691_v19 }
 0x1c7   : > { %v1484_v22 = vpop.f32.mrb[16].mxu1 }
 0x1c8   : > { %v806_v23 = vadd.f32 %v1484_v22, %v1822_v60  ;;  %v797_v24 = vpop.f32.mrb[17].mxu1 }
 0x1c9   : > { %v798_v25 = vadd.f32 %v1822_v60, %v797_v24  ;;  %v1485_v26 = vpop.f32.mrb[18].mxu1 }
 0x1ca   : > { %v809_v27 = vadd.f32 %v1485_v26, %v1822_v60  ;;  %v800_v28 = vpop.f32.mrb[19].mxu1  ;;  %v926_v30 = vmax.f32 %v806_v23, 0.0 }
 0x1cb   : > { %v801_v29 = vadd.f32 %v1822_v60, %v800_v28  ;;  %v924_v32 = vmax.f32 %v798_v25, 0.0 }
 0x1cc   : > { %v927_v31 = vmax.f32 %v809_v27, 0.0 }
 0x1cd   : > { %v925_v33 = vmax.f32 %v801_v29, 0.0 }
 0x1ce   : > { %v957_v35 = vpack.c.bf16 %v927_v31, %v926_v30 }
 0x1cf   : > { %v956_v36 = vpack.c.bf16 %v925_v33, %v924_v32  ;;  %v1488_v37 = vpop.f32.mrb[20].mxu1 }
 0x1d0   : > { %v822_v38 = vadd.f32 %v1488_v37, %v1822_v60  ;;  %v813_v39 = vpop.f32.mrb[21].mxu1 }
 0x1d1   : > { %v814_v40 = vadd.f32 %v1822_v60, %v813_v39  ;;  %v1489_v41 = vpop.f32.mrb[22].mxu1  ;;  %1530 = vmatprep.mubr.bf16.mxu0 %v956_v36 }
 0x1d2   : > { %v825_v42 = vadd.f32 %v1489_v41, %v1822_v60  ;;  %v816_v43 = vpop.f32.mrb[23].mxu1  ;;  %1531 = vmatmul.mubr.bf16.vlgmr.msra.gmra.mrb[16].mxu0 %v957_v35  ;;  %v930_v45 = vmax.f32 %v822_v38, 0.0 }
 0x1d3   : > { %v817_v44 = vadd.f32 %v1822_v60, %v816_v43  ;;  %v928_v47 = vmax.f32 %v814_v40, 0.0 }
 0x1d4   : > { %v931_v46 = vmax.f32 %v825_v42, 0.0 }
 0x1d5   : > { %v929_v48 = vmax.f32 %v817_v44, 0.0 }
 0x1d6   : > { %v959_v49 = vpack.c.bf16 %v931_v46, %v930_v45 }
 0x1d7   : > { %v958_v50 = vpack.c.bf16 %v929_v48, %v928_v47  ;;  %v1492_v51 = vpop.f32.mrb[24].mxu1 }
 0x1d8   : > { %v838_v52 = vadd.f32 %v1492_v51, %v1822_v60  ;;  %v829_v53 = vpop.f32.mrb[25].mxu1 }
 0x1d9   : > { %v830_v54 = vadd.f32 %v1822_v60, %v829_v53  ;;  %v1493_v55 = vpop.f32.mrb[26].mxu1  ;;  %1534 = vmatprep.mubr.bf16.mxu0 %v958_v50 }
 0x1da   : > { %v841_v56 = vadd.f32 %v1493_v55, %v1822_v60  ;;  %v832_v57 = vpop.f32.mrb[27].mxu1  ;;  %1535 = vmatmul.mubr.bf16.gmra.mrb[20].mxu0 %v959_v49  ;;  %v934_v59 = vmax.f32 %v838_v52, 0.0 }
 0x1db   : > { %v833_v58 = vadd.f32 %v1822_v60, %v832_v57  ;;  %v932_v62 = vmax.f32 %v830_v54, 0.0 }
 0x1dc   : > { %v935_v61 = vmax.f32 %v841_v56, 0.0 }
 0x1dd   : > { %v933_v0 = vmax.f32 %v833_v58, 0.0 }
 0x1de   : > { %v961_v1 = vpack.c.bf16 %v935_v61, %v934_v59 }
 0x1df   : > { %v960_v2 = vpack.c.bf16 %v933_v0, %v932_v62  ;;  %v1496_v3 = vpop.f32.mrb[28].mxu1 }
 0x1e0   : > { %v854_v4 = vadd.f32 %v1496_v3, %v1822_v60  ;;  %v845_v5 = vpop.f32.mrb[29].mxu1 }
 0x1e1   : > { %v846_v6 = vadd.f32 %v1822_v60, %v845_v5  ;;  %v1497_v7 = vpop.f32.mrb[30].mxu1  ;;  %1538 = vmatprep.mubr.bf16.mxu0 %v960_v2 }
 0x1e2   : > { %v857_v8 = vadd.f32 %v1497_v7, %v1822_v60  ;;  %v848_v9 = vpop.f32.mrb[31].mxu1  ;;  %1539 = vmatmul.mubr.bf16.gmra.mrb[24].mxu0 %v961_v1  ;;  %v938_v11 = vmax.f32 %v854_v4, 0.0 }
 0x1e3   : > { %v849_v10 = vadd.f32 %v1822_v60, %v848_v9  ;;  %v936_v13 = vmax.f32 %v846_v6, 0.0 }
 0x1e4   : > { %v939_v12 = vmax.f32 %v857_v8, 0.0 }
 0x1e5   : > { %v937_v14 = vmax.f32 %v849_v10, 0.0  ;;  %v1860_v10 = vld [vmem:[%s1940_s6] ss:$0 sm:$0xff] }
 0x1e6   : > { %v963_v15 = vpack.c.bf16 %v939_v12, %v938_v11 }
 0x1e7   : > { %v962_v16 = vpack.c.bf16 %v937_v14, %v936_v13  ;;  %v1500_v17 = vpop.f32.mrb[32].mxu1 }
 0x1e8   : > { %v870_v18 = vadd.f32 %v1500_v17, %v1822_v60  ;;  %v861_v19 = vpop.f32.mrb[33].mxu1 }
 0x1e9   : > { %v862_v20 = vadd.f32 %v1822_v60, %v861_v19  ;;  %v1501_v21 = vpop.f32.mrb[34].mxu1  ;;  %1542 = vmatprep.mubr.bf16.mxu0 %v962_v16 }
 0x1ea   : > { %v873_v34 = vadd.f32 %v1501_v21, %v1822_v60  ;;  %v864_v63 = vpop.f32.mrb[35].mxu1  ;;  %1543 = vmatmul.mubr.bf16.gmra.mrb[28].mxu0 %v963_v15  ;;  %v942_v23 = vmax.f32 %v870_v18, 0.0 }
 0x1eb   : > { %v865_v22 = vadd.f32 %v1822_v60, %v864_v63  ;;  %v940_v25 = vmax.f32 %v862_v20, 0.0 }
 0x1ec   : > { %v943_v24 = vmax.f32 %v873_v34, 0.0 }
 0x1ed   : > { %v941_v26 = vmax.f32 %v865_v22, 0.0 }
 0x1ee   : > { %v965_v27 = vpack.c.bf16 %v943_v24, %v942_v23 }
 0x1ef   : > { %v964_v28 = vpack.c.bf16 %v941_v26, %v940_v25  ;;  %v1504_v29 = vpop.f32.mrb[36].mxu1 }
 0x1f0   : > { %v886_v30 = vadd.f32 %v1504_v29, %v1822_v60  ;;  %v877_v31 = vpop.f32.mrb[37].mxu1 }
 0x1f1   : > { %v878_v32 = vadd.f32 %v1822_v60, %v877_v31  ;;  %v1505_v33 = vpop.f32.mrb[38].mxu1  ;;  %1546 = vmatprep.mubr.bf16.mxu0 %v964_v28 }
 0x1f2   : > { %v889_v35 = vadd.f32 %v1505_v33, %v1822_v60  ;;  %v880_v36 = vpop.f32.mrb[39].mxu1  ;;  %1547 = vmatmul.mubr.bf16.gmra.mrb[32].mxu0 %v965_v27  ;;  %v946_v38 = vmax.f32 %v886_v30, 0.0 }
 0x1f3   : > { %v881_v37 = vadd.f32 %v1822_v60, %v880_v36  ;;  %v944_v40 = vmax.f32 %v878_v32, 0.0 }
 0x1f4   : > { %v947_v39 = vmax.f32 %v889_v35, 0.0 }
 0x1f5   : > { %v945_v41 = vmax.f32 %v881_v37, 0.0 }
 0x1f6   : > { %v967_v42 = vpack.c.bf16 %v947_v39, %v946_v38 }
 0x1f7   : > { %v966_v43 = vpack.c.bf16 %v945_v41, %v944_v40  ;;  %v1508_v44 = vpop.f32.mrb[40].mxu1 }
 0x1f8   : > { %v902_v45 = vadd.f32 %v1508_v44, %v1822_v60  ;;  %v893_v46 = vpop.f32.mrb[41].mxu1 }
 0x1f9   : > { %v894_v47 = vadd.f32 %v1822_v60, %v893_v46  ;;  %v1509_v48 = vpop.f32.mrb[42].mxu1  ;;  %1550 = vmatprep.mubr.bf16.mxu0 %v966_v43 }
 0x1fa   : > { %v905_v49 = vadd.f32 %v1509_v48, %v1822_v60  ;;  %v896_v50 = vpop.f32.mrb[43].mxu1  ;;  %1551 = vmatmul.mubr.bf16.gmra.mrb[36].mxu0 %v967_v42  ;;  %v950_v52 = vmax.f32 %v902_v45, 0.0 }
 0x1fb   : > { %v897_v51 = vadd.f32 %v1822_v60, %v896_v50  ;;  %v948_v54 = vmax.f32 %v894_v47, 0.0 }
 0x1fc   : > { %v951_v53 = vmax.f32 %v905_v49, 0.0 }
 0x1fd   : > { %v949_v55 = vmax.f32 %v897_v51, 0.0 }
 0x1fe   : > { %v969_v56 = vpack.c.bf16 %v951_v53, %v950_v52 }
 0x1ff   : > { %v968_v57 = vpack.c.bf16 %v949_v55, %v948_v54  ;;  %v1512_v58 = vpop.f32.mrb[44].mxu1 }
 0x200   : > { %v918_v59 = vadd.f32 %v1512_v58, %v1822_v60  ;;  %v909_v61 = vpop.f32.mrb[45].mxu1 }
 0x201   : > { %v910_v62 = vadd.f32 %v1822_v60, %v909_v61  ;;  %v1513_v0 = vpop.f32.mrb[46].mxu1  ;;  %1554 = vmatprep.mubr.bf16.mxu0 %v968_v57 }
 0x202   : > { %v921_v1 = vadd.f32 %v1513_v0, %v1822_v60  ;;  %v912_v2 = vpop.f32.mrb[47].mxu1  ;;  %1555 = vmatmul.mubr.bf16.gmra.mrb[40].mxu0 %v969_v56  ;;  %v954_v4 = vmax.f32 %v918_v59, 0.0 }
 0x203   : > { %v913_v3 = vadd.f32 %v1822_v60, %v912_v2  ;;  %v952_v6 = vmax.f32 %v910_v62, 0.0 }
 0x204   : > { %v955_v5 = vmax.f32 %v921_v1, 0.0 }
 0x205   : > { %v953_v7 = vmax.f32 %v913_v3, 0.0 }
 0x206   : > { %v971_v8 = vpack.c.bf16 %v955_v5, %v954_v4 }
 0x207   : > { %v970_v9 = vpack.c.bf16 %v953_v7, %v952_v6 }
 0x209   : > { %1558 = vmatprep.mubr.bf16.mxu0 %v970_v9 }
 0x20a   : > { %1559 = vmatmul.mubr.bf16.gmra.mrb[44].mxu0 %v971_v8 }
 0x2a5   : > { %v1532_v60 = vpop.f32.mrb[16].mxu0 }
 0x2a6   : > { %v1086_v11 = vadd.f32 %v1532_v60, %v1860_v10  ;;  %v1077_v12 = vpop.f32.mrb[17].mxu0 }
 0x2a7   : > { %v1078_v13 = vadd.f32 %v1860_v10, %v1077_v12  ;;  %v1533_v14 = vpop.f32.mrb[18].mxu0 }
 0x2a8   : > { %1206 = vst [vmem:[%s1865_s15 + $0x10] sm:$0xff] %v1086_v11  ;;  %v1089_v15 = vadd.f32 %v1533_v14, %v1860_v10  ;;  %v1080_v16 = vpop.f32.mrb[19].mxu0 }
 0x2a9   : > { %1204 = vst [vmem:[%s1865_s15] sm:$0xff] %v1078_v13  ;;  %v1081_v17 = vadd.f32 %v1860_v10, %v1080_v16 }
 0x2aa   : > { %1207 = vst [vmem:[%s1865_s15 + $0x18] sm:$0xff] %v1089_v15 }
 0x2ab   : > { %1205 = vst [vmem:[%s1865_s15 + $0x8] sm:$0xff] %v1081_v17 }
 0x2ad   : > { %v1536_v18 = vpop.f32.mrb[20].mxu0 }
 0x2ae   : > { %v1102_v19 = vadd.f32 %v1536_v18, %v1860_v10  ;;  %v1093_v20 = vpop.f32.mrb[21].mxu0 }
 0x2af   : > { %v1094_v21 = vadd.f32 %v1860_v10, %v1093_v20  ;;  %v1537_v34 = vpop.f32.mrb[22].mxu0 }
 0x2b0   : > { %1210 = vst [vmem:[%s1865_s15 + $0x30] sm:$0xff] %v1102_v19  ;;  %v1105_v63 = vadd.f32 %v1537_v34, %v1860_v10  ;;  %v1096_v22 = vpop.f32.mrb[23].mxu0 }
 0x2b1   : > { %1208 = vst [vmem:[%s1865_s15 + $0x20] sm:$0xff] %v1094_v21  ;;  %v1097_v23 = vadd.f32 %v1860_v10, %v1096_v22 }
 0x2b2   : > { %1211 = vst [vmem:[%s1865_s15 + $0x38] sm:$0xff] %v1105_v63 }
 0x2b3   : > { %1209 = vst [vmem:[%s1865_s15 + $0x28] sm:$0xff] %v1097_v23 }
 0x2b5   : > { %v1540_v24 = vpop.f32.mrb[24].mxu0 }
 0x2b6   : > { %v1118_v25 = vadd.f32 %v1540_v24, %v1860_v10  ;;  %v1109_v26 = vpop.f32.mrb[25].mxu0 }
 0x2b7   : > { %v1110_v27 = vadd.f32 %v1860_v10, %v1109_v26  ;;  %v1541_v28 = vpop.f32.mrb[26].mxu0 }
 0x2b8   : > { %1214 = vst [vmem:[%s1865_s15 + $0x50] sm:$0xff] %v1118_v25  ;;  %v1121_v29 = vadd.f32 %v1541_v28, %v1860_v10  ;;  %v1112_v30 = vpop.f32.mrb[27].mxu0 }
 0x2b9   : > { %1212 = vst [vmem:[%s1865_s15 + $0x40] sm:$0xff] %v1110_v27  ;;  %v1113_v31 = vadd.f32 %v1860_v10, %v1112_v30 }
 0x2ba   : > { %1215 = vst [vmem:[%s1865_s15 + $0x58] sm:$0xff] %v1121_v29 }
 0x2bb   : > { %1213 = vst [vmem:[%s1865_s15 + $0x48] sm:$0xff] %v1113_v31 }
 0x2bd   : > { %v1544_v32 = vpop.f32.mrb[28].mxu0 }
 0x2be   : > { %v1134_v33 = vadd.f32 %v1544_v32, %v1860_v10  ;;  %v1125_v35 = vpop.f32.mrb[29].mxu0 }
 0x2bf   : > { %v1126_v36 = vadd.f32 %v1860_v10, %v1125_v35  ;;  %v1545_v37 = vpop.f32.mrb[30].mxu0 }
 0x2c0   : > { %1218 = vst [vmem:[%s1865_s15 + $0x70] sm:$0xff] %v1134_v33  ;;  %v1137_v38 = vadd.f32 %v1545_v37, %v1860_v10  ;;  %v1128_v39 = vpop.f32.mrb[31].mxu0 }
 0x2c1   : > { %1216 = vst [vmem:[%s1865_s15 + $0x60] sm:$0xff] %v1126_v36  ;;  %v1129_v40 = vadd.f32 %v1860_v10, %v1128_v39 }
 0x2c2   : > { %1219 = vst [vmem:[%s1865_s15 + $0x78] sm:$0xff] %v1137_v38 }
 0x2c3   : > { %1217 = vst [vmem:[%s1865_s15 + $0x68] sm:$0xff] %v1129_v40 }
 0x2c5   : > { %v1548_v41 = vpop.f32.mrb[32].mxu0 }
 0x2c6   : > { %v1150_v42 = vadd.f32 %v1548_v41, %v1860_v10  ;;  %v1141_v43 = vpop.f32.mrb[33].mxu0 }
 0x2c7   : > { %v1142_v44 = vadd.f32 %v1860_v10, %v1141_v43  ;;  %v1549_v45 = vpop.f32.mrb[34].mxu0 }
 0x2c8   : > { %1222 = vst [vmem:[%s1865_s15 + $0x90] sm:$0xff] %v1150_v42  ;;  %v1153_v46 = vadd.f32 %v1549_v45, %v1860_v10  ;;  %v1144_v47 = vpop.f32.mrb[35].mxu0 }
 0x2c9   : > { %1220 = vst [vmem:[%s1865_s15 + $0x80] sm:$0xff] %v1142_v44  ;;  %v1145_v48 = vadd.f32 %v1860_v10, %v1144_v47 }
 0x2ca   : > { %1223 = vst [vmem:[%s1865_s15 + $0x98] sm:$0xff] %v1153_v46 }
 0x2cb   : > { %1221 = vst [vmem:[%s1865_s15 + $0x88] sm:$0xff] %v1145_v48 }
 0x2cd   : > { %v1552_v49 = vpop.f32.mrb[36].mxu0 }
 0x2ce   : > { %v1166_v50 = vadd.f32 %v1552_v49, %v1860_v10  ;;  %v1157_v51 = vpop.f32.mrb[37].mxu0 }
 0x2cf   : > { %v1158_v52 = vadd.f32 %v1860_v10, %v1157_v51  ;;  %v1553_v53 = vpop.f32.mrb[38].mxu0 }
 0x2d0   : > { %1226 = vst [vmem:[%s1865_s15 + $0xb0] sm:$0xff] %v1166_v50  ;;  %v1169_v54 = vadd.f32 %v1553_v53, %v1860_v10  ;;  %v1160_v55 = vpop.f32.mrb[39].mxu0 }
 0x2d1   : > { %1224 = vst [vmem:[%s1865_s15 + $0xa0] sm:$0xff] %v1158_v52  ;;  %v1161_v56 = vadd.f32 %v1860_v10, %v1160_v55 }
 0x2d2   : > { %1227 = vst [vmem:[%s1865_s15 + $0xb8] sm:$0xff] %v1169_v54 }
 0x2d3   : > { %1225 = vst [vmem:[%s1865_s15 + $0xa8] sm:$0xff] %v1161_v56 }
 0x2d5   : > { %v1556_v57 = vpop.f32.mrb[40].mxu0 }
 0x2d6   : > { %v1182_v58 = vadd.f32 %v1556_v57, %v1860_v10  ;;  %v1173_v59 = vpop.f32.mrb[41].mxu0 }
 0x2d7   : > { %v1174_v61 = vadd.f32 %v1860_v10, %v1173_v59  ;;  %v1557_v62 = vpop.f32.mrb[42].mxu0 }
 0x2d8   : > { %1230 = vst [vmem:[%s1865_s15 + $0xd0] sm:$0xff] %v1182_v58  ;;  %v1185_v0 = vadd.f32 %v1557_v62, %v1860_v10  ;;  %v1176_v1 = vpop.f32.mrb[43].mxu0 }
 0x2d9   : > { %1228 = vst [vmem:[%s1865_s15 + $0xc0] sm:$0xff] %v1174_v61  ;;  %v1177_v2 = vadd.f32 %v1860_v10, %v1176_v1 }
 0x2da   : > { %1231 = vst [vmem:[%s1865_s15 + $0xd8] sm:$0xff] %v1185_v0 }
 0x2db   : > { %1229 = vst [vmem:[%s1865_s15 + $0xc8] sm:$0xff] %v1177_v2 }
 0x2dd   : > { %v1560_v3 = vpop.f32.mrb[44].mxu0 }
 0x2de   : > { %v1198_v4 = vadd.f32 %v1560_v3, %v1860_v10  ;;  %v1189_v5 = vpop.f32.mrb[45].mxu0 }
 0x2df   : > { %v1190_v6 = vadd.f32 %v1860_v10, %v1189_v5  ;;  %v1561_v7 = vpop.f32.mrb[46].mxu0 }
 0x2e0   : > { %1234 = vst [vmem:[%s1865_s15 + $0xf0] sm:$0xff] %v1198_v4  ;;  %v1201_v8 = vadd.f32 %v1561_v7, %v1860_v10  ;;  %v1192_v9 = vpop.f32.mrb[47].mxu0 }
 0x2e1   : > { %1232 = vst [vmem:[%s1865_s15 + $0xe0] sm:$0xff] %v1190_v6  ;;  %v1193_v60 = vadd.f32 %v1860_v10, %v1192_v9 }
 0x2e2   : > { %1235 = vst [vmem:[%s1865_s15 + $0xf8] sm:$0xff] %v1201_v8 }
 0x2e3   : > { %1233 = vst [vmem:[%s1865_s15 + $0xe8] sm:$0xff] %v1193_v60 }
 0x2e4 PF: > { %s17_s24 = sadd.s32 1, %s1620_s24  }
 0x2e5   : > { %p14_p4 = scmp.ge.s32.totalorder %s17_s24, 4  }
 0x2e7   :  { %16 = sbr.rel (!%p14_p4) target bundleno = 1 (0x1), region = 78 }

</bundles_post_ra>
